<compile_context>
chip_gen: v5e
topology: v5e:2x2
jax: 0.10.0
libtpu: 0.0.40
codegen_flags: <defaults>
</compile_context>

<pallas_src>
import jax
import jax.numpy as jnp
from jax import lax
from jax.experimental import pallas as pl
from jax.experimental.pallas import tpu as pltpu


# --------------------------------------------------------------------------
# helpers
# --------------------------------------------------------------------------
def _round_up(x, m):
    return ((x + m - 1) // m) * m


def _vmem_caps():
    """Return (vmem_limit_bytes to request, per-step working-set budget)."""
    try:
        cap = int(pltpu.get_tpu_info().vmem_capacity_bytes)
    except Exception:
        cap = 64 << 20  # conservative if the query is unavailable (v7x-sized)
    limit = max(16 << 20, min(cap - (8 << 20), 96 << 20))
    budget = min(limit // 2, 28 << 20)  # double-buffered working-set target
    return limit, budget


# --------------------------------------------------------------------------
# Small-shape kernel: x fully resident, grid only over N (parallel).
# --------------------------------------------------------------------------
def _linear_relu_small_kernel(x_ref, w_ref, b_ref, o_ref):
    # x: (M, K), w: (tn, K) in PyTorch [out, in] layout -> contract last dims.
    acc = lax.dot_general(
        x_ref[...], w_ref[...],
        dimension_numbers=(((1,), (1,)), ((), ())),
        preferred_element_type=jnp.float32,
    )
    acc = acc + b_ref[...].astype(jnp.float32)
    o_ref[...] = jnp.maximum(acc, 0.0).astype(o_ref.dtype)


# --------------------------------------------------------------------------
# Tiled kernel: f32 scratch accumulator, bias-initialized, ReLU-only epilogue.
# --------------------------------------------------------------------------
def _linear_relu_tiled_kernel(x_ref, w_ref, b_ref, o_ref, acc_ref):
    k = pl.program_id(2)

    @pl.when(k == 0)
    def _():
        # Fold the bias add into the accumulator init (saves an epilogue pass).
        acc_ref[...] = jnp.broadcast_to(
            b_ref[...].astype(jnp.float32), acc_ref.shape)

    acc_ref[...] += lax.dot_general(
        x_ref[...], w_ref[...],
        dimension_numbers=(((1,), (1,)), ((), ())),
        preferred_element_type=jnp.float32,
    )

    @pl.when(k == pl.num_programs(2) - 1)
    def _():
        o_ref[...] = jnp.maximum(acc_ref[...], 0.0).astype(o_ref.dtype)


# --------------------------------------------------------------------------
# tile / split selection
# --------------------------------------------------------------------------
def _pick_small_n_blocks(M, N, K, isx, isw, isb, iso, budget):
    """Return number of N blocks for the small path, or 0 if it won't fit."""
    total = M * K * isx + N * K * isw + N * isb + M * N * iso
    if total <= (1 << 20) or N % 128 != 0:
        nblk = 1
    else:
        units = N // 128
        nblk = min(4, units)
        while nblk > 1 and units % nblk != 0:
            nblk -= 1
    tn = N // nblk
    # conservative: assume everything is double-buffered
    small_vmem = 2 * (M * K * isx + tn * K * isw + tn * isb + M * tn * iso)
    if small_vmem > budget:
        return 0
    return nblk


def _pick_tiled_tiles(M, N, K, isx, isw, iso, budget):
    tm = 512 if M >= 512 else _round_up(M, 8)
    tn = 512 if N >= 512 else _round_up(N, 128)
    k_cap = _round_up(K, 128)
    tk = 128
    for cand in (2048, 1024, 512, 256, 128):
        c = min(cand, k_cap)
        per_step = (2 * (tm * c * isx + tn * c * isw + tn * isw)
                    + 2 * tm * tn * iso + tm * tn * 4)
        if per_step <= budget:
            tk = c
            break
    return tm, tn, tk


# --------------------------------------------------------------------------
# public wrapper
# --------------------------------------------------------------------------
def audio_nn_forward(x, w, b, *, force_tiled=False):
    """y = relu(x @ w.T + b).  x: [M, K]; w: [N, K] (PyTorch layout); b: [N]."""
    M, K = x.shape
    N, K2 = w.shape
    assert K == K2 and b.shape == (N,)

    isx = jnp.dtype(x.dtype).itemsize
    isw = jnp.dtype(w.dtype).itemsize
    isb = jnp.dtype(b.dtype).itemsize
    iso = jnp.dtype(x.dtype).itemsize  # output matches activation dtype

    limit, budget = _vmem_caps()
    b2d = b.reshape(1, N)

    cost = pl.CostEstimate(
        flops=2 * M * N * K,
        transcendentals=0,
        bytes_accessed=M * K * isx + N * K * isw + N * isb + M * N * iso,
    )

    # ------------------ small / medium resident path ------------------
    if not force_tiled:
        nblk = _pick_small_n_blocks(M, N, K, isx, isw, isb, iso, budget)
        if nblk > 0:
            tn = N // nblk
            return pl.pallas_call(
                _linear_relu_small_kernel,
                out_shape=jax.ShapeDtypeStruct((M, N), x.dtype),
                grid_spec=pltpu.PrefetchScalarGridSpec(
                    num_scalar_prefetch=0,
                    grid=(nblk,),
                    in_specs=[
                        pl.BlockSpec((M, K), lambda j: (0, 0)),    # x (resident)
                        pl.BlockSpec((tn, K), lambda j: (j, 0)),   # w [out,in]
                        pl.BlockSpec((1, tn), lambda j: (0, j)),   # bias
                    ],
                    out_specs=pl.BlockSpec((M, tn), lambda j: (0, j)),
                ),
                compiler_params=pltpu.CompilerParams(
                    dimension_semantics=("parallel",),
                    vmem_limit_bytes=limit,
                ),
                cost_estimate=cost,
            )(x, w, b2d)

    # -------------------------- tiled path -----------------------------
    tm, tn, tk = _pick_tiled_tiles(M, N, K, isx, isw, iso, budget)
    Mp, Np, Kp = _round_up(M, tm), _round_up(N, tn), _round_up(K, tk)

    xp = x if (Mp, Kp) == (M, K) else jnp.pad(x, ((0, Mp - M), (0, Kp - K)))
    wp = w if (Np, Kp) == (N, K) else jnp.pad(w, ((0, Np - N), (0, Kp - K)))
    bp = b2d if Np == N else jnp.pad(b2d, ((0, 0), (0, Np - N)))

    out = pl.pallas_call(
        _linear_relu_tiled_kernel,
        out_shape=jax.ShapeDtypeStruct((Mp, Np), x.dtype),
        grid_spec=pltpu.PrefetchScalarGridSpec(
            num_scalar_prefetch=0,
            grid=(Mp // tm, Np // tn, Kp // tk),
            in_specs=[
                pl.BlockSpec((tm, tk), lambda i, j, k: (i, k)),   # x tile
                pl.BlockSpec((tn, tk), lambda i, j, k: (j, k)),   # w tile [out,in]
                pl.BlockSpec((1, tn), lambda i, j, k: (0, j)),    # bias tile
            ],
            out_specs=pl.BlockSpec((tm, tn), lambda i, j, k: (i, j)),
            scratch_shapes=[pltpu.VMEM((tm, tn), jnp.float32)],
        ),
        compiler_params=pltpu.CompilerParams(
            dimension_semantics=("parallel", "parallel", "arbitrary"),
            vmem_limit_bytes=limit,
        ),
        cost_estimate=cost,
    )(xp, wp, bp)

    if (Mp, Np) != (M, N):
        out = out[:M, :N]
    return out


# --------------------------------------------------------------------------
# self-test
# --------------------------------------------------------------------------
if __name__ == "__main__":
    def _ref(x, w, b):
        xf = x.astype(jnp.float32)
        wf = w.astype(jnp.float32)
        bf = b.astype(jnp.float32)
        return jnp.maximum(xf @ wf.T + bf, 0.0)

    root = jax.random.PRNGKey(0)

    # 1) small shapes (kilobyte-scale -> single-block resident path)
    k1, k2, k3, root = jax.random.split(root, 4)
    M, K, N = 8, 256, 256
    x = jax.random.normal(k1, (M, K), dtype=jnp.float32)
    w = jax.random.normal(k2, (N, K), dtype=jnp.float32) / jnp.sqrt(K)  # [out,in]
    b = jax.random.normal(k3, (N,), dtype=jnp.float32) * 0.01
    y = audio_nn_forward(x, w, b)
    jax.block_until_ready(y)
    assert y.dtype == x.dtype
    assert jnp.allclose(y.astype(jnp.float32), _ref(x, w, b), atol=1e-4, rtol=1e-4)

    # 2) module-default dims (1024): resident path with a parallel N split
    k1, k2, k3, root = jax.random.split(root, 4)
    M, K, N = 256, 1024, 1024
    x = jax.random.normal(k1, (M, K), dtype=jnp.float32)
    w = jax.random.normal(k2, (N, K), dtype=jnp.float32) / jnp.sqrt(K)
    b = jax.random.normal(k3, (N,), dtype=jnp.float32) * 0.01
    y = audio_nn_forward(x, w, b)
    jax.block_until_ready(y)
    assert jnp.allclose(y.astype(jnp.float32), _ref(x, w, b), atol=1e-3, rtol=1e-3)

    # 3) same shapes, forced tiled path (scratch accumulator + bias init)
    y = audio_nn_forward(x, w, b, force_tiled=True)
    jax.block_until_ready(y)
    assert jnp.allclose(y.astype(jnp.float32), _ref(x, w, b), atol=1e-3, rtol=1e-3)

    # 4) bf16 activations/weights through the tiled path (f32 accumulation)
    xb = x.astype(jnp.bfloat16)
    wb = w.astype(jnp.bfloat16)
    bb = b.astype(jnp.bfloat16)
    yb = audio_nn_forward(xb, wb, bb, force_tiled=True)
    jax.block_until_ready(yb)
    assert yb.dtype == jnp.bfloat16
    assert jnp.allclose(yb.astype(jnp.float32), _ref(xb, wb, bb),
                        atol=5e-2, rtol=2e-2)

    # 5) non-tile-multiple dims exercise the padding path
    k1, k2, k3, root = jax.random.split(root, 4)
    M, K, N = 100, 1000, 1000
    x = jax.random.normal(k1, (M, K), dtype=jnp.float32)
    w = jax.random.normal(k2, (N, K), dtype=jnp.float32) / jnp.sqrt(K)
    b = jax.random.normal(k3, (N,), dtype=jnp.float32) * 0.01
    y = audio_nn_forward(x, w, b, force_tiled=True)
    jax.block_until_ready(y)
    assert y.shape == (M, N)
    assert jnp.allclose(y.astype(jnp.float32), _ref(x, w, b), atol=1e-3, rtol=1e-3)

    print("KERNEL_OK")
</pallas_src>

<mosaic_0001>
module attributes {stable_mosaic.version = 11 : i64} {
  func.func @_linear_relu_small_kernel(%arg0: i32, %arg1: memref<8x256xf32, #tpu.memory_space<vmem>>, %arg2: memref<256x256xf32, #tpu.memory_space<vmem>>, %arg3: memref<1x256xf32, #tpu.memory_space<vmem>>, %arg4: memref<8x256xf32, #tpu.memory_space<vmem>>) attributes {dimension_semantics = [#tpu.dimension_semantics<parallel>], iteration_bounds = array<i64: 1>, scalar_prefetch = 0 : i64, scratch_operands = 0 : i64, tpu.core_type = #tpu.core_type<tc>, window_params = [{pipeline_mode = #tpu.pipeline_mode<synchronous>, transform_indices = @transform_0, window_bounds = array<i64: 8, 256>}, {transform_indices = @transform_1, window_bounds = array<i64: 256, 256>}, {transform_indices = @transform_2, window_bounds = array<i64: 1, 256>}, {transform_indices = @transform_3, window_bounds = array<i64: 8, 256>}]} {
    %c0 = arith.constant 0 : index
    %c0_0 = arith.constant 0 : index
    %0 = vector.load %arg1[%c0, %c0_0] : memref<8x256xf32, #tpu.memory_space<vmem>>, vector<8x256xf32>
    %c0_1 = arith.constant 0 : index
    %c0_2 = arith.constant 0 : index
    %1 = vector.load %arg2[%c0_1, %c0_2] : memref<256x256xf32, #tpu.memory_space<vmem>>, vector<256x256xf32>
    %cst = arith.constant dense<0.000000e+00> : vector<8x256xf32>
    %2 = tpu.matmul %0, %1, %cst {dimension_numbers = #tpu.dot_dimension_numbers<[1], [1], [0], [0], [0, 0, 1, 0], [], []>} : vector<8x256xf32>, vector<256x256xf32>, vector<8x256xf32> -> vector<8x256xf32>
    %c0_3 = arith.constant 0 : index
    %c0_4 = arith.constant 0 : index
    %3 = vector.load %arg3[%c0_3, %c0_4] : memref<1x256xf32, #tpu.memory_space<vmem>>, vector<1x256xf32>
    %4 = vector.broadcast %3 : vector<1x256xf32> to vector<8x256xf32>
    %5 = arith.addf %2, %4 : vector<8x256xf32>
    %cst_5 = arith.constant 0.000000e+00 : f32
    %6 = vector.broadcast %cst_5 : f32 to vector<8x256xf32>
    %7 = arith.maximumf %5, %6 : vector<8x256xf32>
    %c0_6 = arith.constant 0 : index
    %c0_7 = arith.constant 0 : index
    %8 = vector.load %arg4[%c0_6, %c0_7] : memref<8x256xf32, #tpu.memory_space<vmem>>, vector<8x256xf32>
    tpu.vector_store %arg4[%c0_6, %c0_7], %7 {strides = array<i32>} : memref<8x256xf32, #tpu.memory_space<vmem>>, vector<8x256xf32>,
    return
  }
  func.func @transform_0(%arg0: i32) -> (i32, i32) {
    %c0_i32 = arith.constant 0 : i32
    %c0_i32_0 = arith.constant 0 : i32
    %c0_i32_1 = arith.constant 0 : i32
    return %c0_i32, %c0_i32_0 : i32, i32
  }
  func.func @transform_1(%arg0: i32) -> (i32, i32) {
    %c0_i32 = arith.constant 0 : i32
    %c0_i32_0 = arith.constant 0 : i32
    return %arg0, %c0_i32 : i32, i32
  }
  func.func @transform_2(%arg0: i32) -> (i32, i32) {
    %c0_i32 = arith.constant 0 : i32
    %c0_i32_0 = arith.constant 0 : i32
    return %c0_i32, %arg0 : i32, i32
  }
  func.func @transform_3(%arg0: i32) -> (i32, i32) {
    %c0_i32 = arith.constant 0 : i32
    %c0_i32_0 = arith.constant 0 : i32
    return %c0_i32, %arg0 : i32, i32
  }
}

</mosaic_0001>

<bundles_post_ra>
// kernel: tpu_custom_call.1
= control target key start
LH: loop header
LB: loop body
LE: loop exit
PB: predicated region body
PF: predicated region fallthrough
CT: control target
= control target key end

     0   :  { %8 = vsyncpa [#allocation3], 0  ;;  %s378_s0 = inlined_call_operand.hbm [shape: f32[8,256], index: 0, kind: input, shape index: {}]   ;;  %s379_s1 = inlined_call_operand.hbm [shape: f32[256,256], index: 1, kind: input, shape index: {}]   ;;  %s380_s2 = inlined_call_operand.hbm [shape: f32[1,256], index: 2, kind: input, shape index: {}]   ;;  %s381_s3 = inlined_call_operand.hbm [shape: f32[8,256], index: 3, kind: output, shape index: {}]  }
   0x1   :  { %9 = vsyncpa [#allocation6], 0  ;;  %s26_s14 = sshll.u32 %s379_s1, 4  ;;  %s27_s14 = int_to_ptr.hbm [resolvable:$true] %s26_s14 }
   0x2   :  { %10 = vsyncpa [#allocation4], 0  ;;  %s340_s15 = smov [#allocation5]   ;;  %s16_s19 = sshll.u32 %s378_s0, 4  ;;  %s17_s19 = int_to_ptr.hbm [resolvable:$true] %s16_s19 }
   0x3   :  { %s28_s16 = sshll.u32 %s340_s15, 4  ;;  %s341_s20 = smov 256   ;;  %s29_s16 = int_to_ptr.vmem [resolvable:$true] %s28_s16 }
   0x4   :  { %s342_s21 = smov 16   ;;  %s343_s22 = smov [#allocation2]  }
   0x5   :  { %34 = dma.hbm_to_vmem [thread:$0]  %s27_s14, 8192, %s29_s16, [#allocation6], %s341_s20, %s341_s20, %s342_s21  }
   0x6   :  { %s18_s23 = sshll.u32 %s343_s22, 4  ;;  %s40_s26 = sshll.u32 %s380_s2, 4  ;;  %s19_s23 = int_to_ptr.vmem [resolvable:$true] %s18_s23  ;;  %s41_s26 = int_to_ptr.hbm [resolvable:$true] %s40_s26 }
   0x7   :  { %21 = dma.hbm_to_vmem [thread:$0]  %s17_s19, 256, %s19_s23, [#allocation3]  }
   0x8   :  { %s344_s1 = smov [#allocation7]  }
   0x9   :  { %s42_s27 = sshll.u32 %s344_s1, 4  ;;  %s43_s27 = int_to_ptr.vmem [resolvable:$true] %s42_s27 }
   0xa   :  { %45 = dma.hbm_to_vmem [thread:$0]  %s41_s26, 32, %s43_s27, [#allocation6]  }
   0xb   :  { %334 = dma.done.wait [#allocation3], 256  }
   0xc   :  { %335 = vsyncadd [#allocation3], 4294967040 }
   0xd   :  { %336 = dma.done.wait [#allocation6], 8224  }
   0xe   :  { %337 = vsyncadd [#allocation6], 4294959072  ;;  %v122_v0 = vld [vmem:[#allocation5 + $0x1f0] sm:$0xff]  ;;  %v123_v1 = vld [vmem:[#allocation5 + $0x1f8] sm:$0xff]  ;;  %s345_s0 = smov [#allocation8]   ;;  %s221_s30 = sshll.u32 %s381_s3, 4  ;;  %s222_s30 = int_to_ptr.hbm [resolvable:$true] %s221_s30 }
   0xf   :  { %170 = vmatpush.xpose.msra.mxu2 %v122_v0  ;;  %190 = vmatpush.xpose.msra.mxu3 %v123_v1  ;;  %v90_v2 = vld [vmem:[#allocation5 + $0xf0] sm:$0xff]  ;;  %v91_v3 = vld [vmem:[#allocation5 + $0xf8] sm:$0xff]  ;;  %v120_v4 = vld [vmem:[#allocation5 + $0x1e0] sm:$0xff]  ;;  %s219_s2 = sshll.u32 %s345_s0, 4  ;;  %s220_s2 = int_to_ptr.vmem [resolvable:$true] %s219_s2 }
  0x10   :  { %130 = vmatpush.xpose.msra.mxu0 %v90_v2  ;;  %v121_v5 = vld [vmem:[#allocation5 + $0x1e8] sm:$0xff]  ;;  %150 = vmatpush.xpose.msra.mxu1 %v91_v3  ;;  %v88_v6 = vld [vmem:[#allocation5 + $0xe0] sm:$0xff]  ;;  %v118_v8 = vld [vmem:[#allocation5 + $0x1d0] sm:$0xff] }
  0x11   :  { %v89_v7 = vld [vmem:[#allocation5 + $0xe8] sm:$0xff]  ;;  %v119_v9 = vld [vmem:[#allocation5 + $0x1d8] sm:$0xff]  ;;  %v86_v10 = vld [vmem:[#allocation5 + $0xd0] sm:$0xff] }
  0x12   :  { %v87_v11 = vld [vmem:[#allocation5 + $0xd8] sm:$0xff]  ;;  %v116_v12 = vld [vmem:[#allocation5 + $0x1c0] sm:$0xff]  ;;  %v117_v13 = vld [vmem:[#allocation5 + $0x1c8] sm:$0xff] }
  0x13   :  { %171 = vmatpush.xpose.msra.mxu2 %v120_v4  ;;  %191 = vmatpush.xpose.msra.mxu3 %v121_v5  ;;  %v84_v14 = vld [vmem:[#allocation5 + $0xc0] sm:$0xff]  ;;  %v85_v15 = vld [vmem:[#allocation5 + $0xc8] sm:$0xff]  ;;  %v114_v16 = vld [vmem:[#allocation5 + $0x1b0] sm:$0xff] }
  0x14   :  { %131 = vmatpush.xpose.msra.mxu0 %v88_v6  ;;  %151 = vmatpush.xpose.msra.mxu1 %v89_v7  ;;  %v115_v17 = vld [vmem:[#allocation5 + $0x1b8] sm:$0xff]  ;;  %v82_v18 = vld [vmem:[#allocation5 + $0xb0] sm:$0xff]  ;;  %v112_v20 = vld [vmem:[#allocation5 + $0x1a0] sm:$0xff] }
  0x15   :  { %v83_v19 = vld [vmem:[#allocation5 + $0xb8] sm:$0xff]  ;;  %v113_v21 = vld [vmem:[#allocation5 + $0x1a8] sm:$0xff]  ;;  %v80_v22 = vld [vmem:[#allocation5 + $0xa0] sm:$0xff] }
  0x16   :  { %v81_v23 = vld [vmem:[#allocation5 + $0xa8] sm:$0xff]  ;;  %v110_v24 = vld [vmem:[#allocation5 + $0x190] sm:$0xff]  ;;  %v111_v25 = vld [vmem:[#allocation5 + $0x198] sm:$0xff] }
  0x17   :  { %172 = vmatpush.xpose.msra.mxu2 %v118_v8  ;;  %192 = vmatpush.xpose.msra.mxu3 %v119_v9  ;;  %v78_v26 = vld [vmem:[#allocation5 + $0x90] sm:$0xff]  ;;  %v79_v27 = vld [vmem:[#allocation5 + $0x98] sm:$0xff]  ;;  %v108_v28 = vld [vmem:[#allocation5 + $0x180] sm:$0xff] }
  0x18   :  { %132 = vmatpush.xpose.msra.mxu0 %v86_v10  ;;  %152 = vmatpush.xpose.msra.mxu1 %v87_v11  ;;  %v109_v29 = vld [vmem:[#allocation5 + $0x188] sm:$0xff]  ;;  %v76_v30 = vld [vmem:[#allocation5 + $0x80] sm:$0xff]  ;;  %v106_v32 = vld [vmem:[#allocation5 + $0x170] sm:$0xff] }
  0x19   :  { %v77_v31 = vld [vmem:[#allocation5 + $0x88] sm:$0xff]  ;;  %v107_v33 = vld [vmem:[#allocation5 + $0x178] sm:$0xff]  ;;  %v74_v34 = vld [vmem:[#allocation5 + $0x70] sm:$0xff] }
  0x1a   :  { %v75_v35 = vld [vmem:[#allocation5 + $0x78] sm:$0xff]  ;;  %v104_v36 = vld [vmem:[#allocation5 + $0x160] sm:$0xff]  ;;  %v105_v37 = vld [vmem:[#allocation5 + $0x168] sm:$0xff] }
  0x1b   :  { %173 = vmatpush.xpose.msra.mxu2 %v116_v12  ;;  %193 = vmatpush.xpose.msra.mxu3 %v117_v13  ;;  %v72_v38 = vld [vmem:[#allocation5 + $0x60] sm:$0xff]  ;;  %v73_v39 = vld [vmem:[#allocation5 + $0x68] sm:$0xff]  ;;  %v102_v40 = vld [vmem:[#allocation5 + $0x150] sm:$0xff] }
  0x1c   :  { %133 = vmatpush.xpose.msra.mxu0 %v84_v14  ;;  %153 = vmatpush.xpose.msra.mxu1 %v85_v15  ;;  %v103_v41 = vld [vmem:[#allocation5 + $0x158] sm:$0xff]  ;;  %v70_v42 = vld [vmem:[#allocation5 + $0x50] sm:$0xff]  ;;  %v100_v44 = vld [vmem:[#allocation5 + $0x140] sm:$0xff] }
  0x1d   :  { %v71_v43 = vld [vmem:[#allocation5 + $0x58] sm:$0xff]  ;;  %v101_v45 = vld [vmem:[#allocation5 + $0x148] sm:$0xff]  ;;  %v68_v46 = vld [vmem:[#allocation5 + $0x40] sm:$0xff] }
  0x1e   :  { %v69_v47 = vld [vmem:[#allocation5 + $0x48] sm:$0xff]  ;;  %v98_v48 = vld [vmem:[#allocation5 + $0x130] sm:$0xff]  ;;  %v99_v49 = vld [vmem:[#allocation5 + $0x138] sm:$0xff] }
  0x1f   :  { %174 = vmatpush.xpose.msra.mxu2 %v114_v16  ;;  %194 = vmatpush.xpose.msra.mxu3 %v115_v17  ;;  %v66_v50 = vld [vmem:[#allocation5 + $0x30] sm:$0xff]  ;;  %v67_v51 = vld [vmem:[#allocation5 + $0x38] sm:$0xff]  ;;  %v96_v52 = vld [vmem:[#allocation5 + $0x120] sm:$0xff] }
  0x20   :  { %134 = vmatpush.xpose.msra.mxu0 %v82_v18  ;;  %154 = vmatpush.xpose.msra.mxu1 %v83_v19  ;;  %v97_v53 = vld [vmem:[#allocation5 + $0x128] sm:$0xff]  ;;  %v64_v54 = vld [vmem:[#allocation5 + $0x20] sm:$0xff]  ;;  %v94_v56 = vld [vmem:[#allocation5 + $0x110] sm:$0xff] }
  0x21   :  { %v65_v55 = vld [vmem:[#allocation5 + $0x28] sm:$0xff]  ;;  %v95_v57 = vld [vmem:[#allocation5 + $0x118] sm:$0xff]  ;;  %v62_v58 = vld [vmem:[#allocation5 + $0x10] sm:$0xff] }
  0x22   :  { %v63_v59 = vld [vmem:[#allocation5 + $0x18] sm:$0xff]  ;;  %v92_v60 = vld [vmem:[#allocation5 + $0x100] sm:$0xff]  ;;  %v93_v61 = vld [vmem:[#allocation5 + $0x108] sm:$0xff] }
  0x23   :  { %175 = vmatpush.xpose.msra.mxu2 %v112_v20  ;;  %195 = vmatpush.xpose.msra.mxu3 %v113_v21  ;;  %v60_v62 = vld [vmem:[#allocation5] sm:$0xff]  ;;  %v61_v63 = vld [vmem:[#allocation5 + $0x8] sm:$0xff]  ;;  %v58_v0 = vld [vmem:[#allocation2] sm:$0xff] }
  0x24   :  { %135 = vmatpush.xpose.msra.mxu0 %v80_v22  ;;  %155 = vmatpush.xpose.msra.mxu1 %v81_v23  ;;  %v59_v1 = vld [vmem:[#allocation2 + $0x8] sm:$0xff]  ;;  %v124_v2 = vld [vmem:[#allocation7] sm:$0x3] }
  0x25   :  { %v126_v3 = vperm.slane %v124_v2, 0  ;;  %v127_v7 = vperm.slane %v124_v2, 1 }
  0x27   :  { %176 = vmatpush.xpose.msra.mxu2 %v110_v24  ;;  %196 = vmatpush.xpose.msra.mxu3 %v111_v25 }
  0x28   :  { %136 = vmatpush.xpose.msra.mxu0 %v78_v26  ;;  %156 = vmatpush.xpose.msra.mxu1 %v79_v27 }
  0x2b   :  { %177 = vmatpush.xpose.msra.mxu2 %v108_v28  ;;  %197 = vmatpush.xpose.msra.mxu3 %v109_v29 }
  0x2c   :  { %137 = vmatpush.xpose.msra.mxu0 %v76_v30  ;;  %157 = vmatpush.xpose.msra.mxu1 %v77_v31 }
  0x2f   :  { %178 = vmatpush.xpose.msra.mxu2 %v106_v32  ;;  %198 = vmatpush.xpose.msra.mxu3 %v107_v33 }
  0x30   :  { %138 = vmatpush.xpose.msra.mxu0 %v74_v34  ;;  %158 = vmatpush.xpose.msra.mxu1 %v75_v35 }
  0x33   :  { %179 = vmatpush.xpose.msra.mxu2 %v104_v36  ;;  %199 = vmatpush.xpose.msra.mxu3 %v105_v37 }
  0x34   :  { %139 = vmatpush.xpose.msra.mxu0 %v72_v38  ;;  %159 = vmatpush.xpose.msra.mxu1 %v73_v39 }
  0x37   :  { %180 = vmatpush.xpose.msra.mxu2 %v102_v40  ;;  %200 = vmatpush.xpose.msra.mxu3 %v103_v41 }
  0x38   :  { %140 = vmatpush.xpose.msra.mxu0 %v70_v42  ;;  %160 = vmatpush.xpose.msra.mxu1 %v71_v43 }
  0x3b   :  { %181 = vmatpush.xpose.msra.mxu2 %v100_v44  ;;  %201 = vmatpush.xpose.msra.mxu3 %v101_v45 }
  0x3c   :  { %141 = vmatpush.xpose.msra.mxu0 %v68_v46  ;;  %161 = vmatpush.xpose.msra.mxu1 %v69_v47 }
  0x3f   :  { %182 = vmatpush.xpose.msra.mxu2 %v98_v48  ;;  %202 = vmatpush.xpose.msra.mxu3 %v99_v49 }
  0x40   :  { %142 = vmatpush.xpose.msra.mxu0 %v66_v50  ;;  %162 = vmatpush.xpose.msra.mxu1 %v67_v51 }
  0x43   :  { %183 = vmatpush.xpose.msra.mxu2 %v96_v52  ;;  %203 = vmatpush.xpose.msra.mxu3 %v97_v53 }
  0x44   :  { %143 = vmatpush.xpose.msra.mxu0 %v64_v54  ;;  %163 = vmatpush.xpose.msra.mxu1 %v65_v55 }
  0x47   :  { %184 = vmatpush.xpose.msra.mxu2 %v94_v56  ;;  %204 = vmatpush.xpose.msra.mxu3 %v95_v57 }
  0x48   :  { %144 = vmatpush.xpose.msra.mxu0 %v62_v58  ;;  %164 = vmatpush.xpose.msra.mxu1 %v63_v59 }
  0x4b   :  { %185 = vmatpush.xpose.msra.mxu2 %v92_v60  ;;  %205 = vmatpush.xpose.msra.mxu3 %v93_v61 }
  0x4c   :  { %145 = vmatpush.xpose.msra.mxu0 %v60_v62  ;;  %165 = vmatpush.xpose.msra.mxu1 %v61_v63 }
  0x4e   :  { %186 = vmatmul.f32.vlgmr.msra.gmra.mxu2 %v58_v0  ;;  %206 = vmatmul.f32.vlgmr.msra.gmra.mxu3 %v59_v1 }
  0x4f   :  { %146 = vmatmul.f32.vlgmr.msra.gmra.mxu0 %v58_v0  ;;  %166 = vmatmul.f32.vlgmr.msra.gmra.mxu1 %v59_v1 }
  0xcc   :  { %v147_v4 = vpop.f32.mrf.mxu0  ;;  %v167_v5 = vpop.f32.mrf.mxu1 }
  0xcd   :  { %v148_v6 = vadd.f32 %v147_v4, %v126_v3 }
  0xcf   :  { %v168_v8 = vadd.f32 %v167_v5, %v148_v6 }
  0xd1   :  { %v187_v9 = vpop.f32.mrf.mxu2  ;;  %v210_v10 = vmax.f32 %v168_v8, 0.0  ;;  %v207_v11 = vpop.f32.mrf.mxu3 }
  0xd2   :  { %v188_v12 = vadd.f32 %v187_v9, %v127_v7 }
  0xd3   :  { %212 = vst [vmem:[#allocation8] sm:$0xff] %v210_v10 }
  0xd4   :  { %v208_v13 = vadd.f32 %v207_v11, %v188_v12 }
  0xd6   :  { %v211_v14 = vmax.f32 %v208_v13, 0.0 }
  0xd8   :  { %213 = vst [vmem:[#allocation8 + $0x8] sm:$0xff] %v211_v14 }
  0xd9   :  { %224 = dma.vmem_to_hbm [thread:$0]  %s220_s2, 256, %s222_s30, [#allocation4]  }
  0xda   :  { %338 = dma.done.wait [#allocation4], 256  }
  0xdb   :  { %339 = vsyncadd [#allocation4], 4294967040 }
  0xdc   :  { %229 = vsyncpa [#allocation3], 1 }
  0xdd   :  { %230 = vsyncpa [#allocation6], 1 }
  0xde   :  { %231 = vsyncpa [#allocation4], 1 }

</bundles_post_ra>
